<compile_context>
chip_gen: v5e
topology: v5e:2x2
jax: 0.10.0
libtpu: 0.0.40
codegen_flags: <defaults>
</compile_context>

<pallas_src>
import functools

import jax
import jax.numpy as jnp
from jax.experimental import pallas as pl
from jax.experimental.pallas import tpu as pltpu


def _cdiv(a, b):
    return -(-a // b)


def _max_identity(dtype):
    dtype = jnp.dtype(dtype)
    if jnp.issubdtype(dtype, jnp.floating):
        return -float("inf")
    if jnp.issubdtype(dtype, jnp.integer):
        return int(jnp.iinfo(dtype).min)
    raise NotImplementedError(f"unsupported pooling dtype: {dtype}")


def _sublane_multiple(dtype):
    # Second-to-last block-dim packing rule: 8 (4-byte), 16 (2-byte), 32 (1-byte).
    return max(8, 32 // jnp.dtype(dtype).itemsize)


def _choose_fold(hw, c, max_lanes=1024):
    """Divisor k of H*W maximizing 128-lane density of k*C (ties -> smallest k)."""
    best_density, best_k = -1.0, 1
    k = 1
    while k <= hw and k * c <= max_lanes:
        if hw % k == 0:
            kc = k * c
            density = kc / float(_cdiv(kc, 128) * 128)
            if density > best_density + 1e-9:
                best_density, best_k = density, k
        k += 1
    return best_k


def _choose_row_tile(num_rows, row_bytes, sublane, budget_bytes):
    """Largest multiple-of-`sublane` row count within the per-buffer budget."""
    if num_rows <= sublane:
        return num_rows
    max_rows = max(sublane, budget_bytes // max(row_bytes, 1))
    tile = max(sublane, (max_rows // sublane) * sublane)
    if tile >= num_rows:
        return num_rows            # block dim == full array dim is always legal
    return tile


def _make_pool_kernel(num_rows, row_tile, blocks_per_split, total_blocks, fill):
    """Running-max kernel over the folded row axis.

    Grid is (num_splits, blocks_per_split); each split owns its own lane-dense
    (1, B, k*C) output block, resident in VMEM along the inner axis.  The
    ragged last block is reduced over a static tail sub-slice; padded grid
    points (row-block index past the end) are no-ops (max is idempotent).
    """
    tail = num_rows - (total_blocks - 1) * row_tile     # valid rows in last block
    ragged = tail != row_tile

    def kernel(x_ref, out_ref):
        i = pl.program_id(1)

        @pl.when(i == 0)
        def _init():
            out_ref[...] = jnp.full(out_ref.shape, fill, out_ref.dtype)

        def accum(rows):
            out_ref[...] = jnp.maximum(
                out_ref[...], jnp.max(rows, axis=1).reshape(out_ref.shape))

        if not ragged:
            accum(x_ref[...])
        else:
            rb = pl.program_id(0) * blocks_per_split + i

            @pl.when(rb < total_blocks - 1)
            def _interior():
                accum(x_ref[...])

            @pl.when(rb == total_blocks - 1)
            def _edge():
                accum(x_ref[:, 0:tail, :])
            # rb == total_blocks (padded grid point): skip both branches.

    return kernel


def _mlp_kernel(part_ref, w1_ref, b1_ref, w2_ref, b2_ref, out_ref, *, num_folds):
    """Merge split/fold partial maxima; fc1 + ELU; fc2 + sigmoid. Runs once."""
    c = out_ref.shape[-1]
    part = jnp.max(part_ref[...].astype(jnp.float32), axis=0)       # (B, k*C)
    pooled = part[:, 0:c]
    for j in range(1, num_folds):
        pooled = jnp.maximum(pooled, part[:, j * c:(j + 1) * c])    # (B, C)

    h = jnp.dot(pooled, w1_ref[...], preferred_element_type=jnp.float32)
    h = h + b1_ref[...]
    h = jnp.where(h > 0, h, jnp.expm1(jnp.minimum(h, 0.0)))         # ELU(alpha=1)

    y = jnp.dot(h, w2_ref[...], preferred_element_type=jnp.float32)
    y = y + b2_ref[...]
    out_ref[...] = (1.0 / (1.0 + jnp.exp(-y))).astype(out_ref.dtype)


def frequency_attention(x_nhwc, w1, b1, w2, b2,
                        *, tile_budget_bytes=8 * 1024 * 1024):
    """x_nhwc: (B, H, W, C). Returns the (B, 1, 1, C) attention gate."""
    B, H, W, C = x_nhwc.shape
    hidden = w1.shape[1]
    HW = H * W
    dtype = x_nhwc.dtype
    itemsize = jnp.dtype(dtype).itemsize
    fill = _max_identity(dtype)

    # Lane folding: pack k spatial positions into the lane axis (contiguous
    # regroup; the global max is invariant to the grouping).
    k = _choose_fold(HW, C)
    kC = k * C
    R = HW // k
    x_folded = x_nhwc.reshape(B, R, kC)

    # Row tiling and grid.
    sublane = _sublane_multiple(dtype)
    row_bytes = B * kC * itemsize
    tR = _choose_row_tile(R, row_bytes, sublane, tile_budget_bytes)
    total_blocks = _cdiv(R, tR)
    num_splits = 2 if total_blocks >= 2 else 1   # both v7x TCs; ~free on 1-TC chips
    bps = _cdiv(total_blocks, num_splits)

    if num_splits * bps > total_blocks:
        def x_index_map(s, i):                   # keep the DMA in bounds
            return (0, jnp.minimum(s * bps + i, total_blocks - 1), 0)
    else:
        def x_index_map(s, i):
            return (0, s * bps + i, 0)

    n_buf = 2
    x_spec = pl.BlockSpec((B, tR, kC), x_index_map)
    if bps >= 3 and hasattr(pl, "Buffered"):
        try:    # 3-deep buffering on the streamed input hides DMA issue latency
            x_spec = pl.BlockSpec((B, tR, kC), x_index_map,
                                  pipeline_mode=pl.Buffered(3))
            n_buf = 3
        except TypeError:
            pass

    tile_bytes = B * tR * kC * itemsize
    vmem_limit = int(min(48 * 1024 * 1024, n_buf * tile_bytes + (16 << 20)))

    partial = pl.pallas_call(
        _make_pool_kernel(R, tR, bps, total_blocks, fill),
        out_shape=jax.ShapeDtypeStruct((num_splits, B, kC), dtype),
        grid=(num_splits, bps),
        in_specs=[x_spec],
        out_specs=pl.BlockSpec((1, B, kC), lambda s, i: (s, 0, 0)),
        compiler_params=pltpu.CompilerParams(
            dimension_semantics=("parallel", "arbitrary"),
            vmem_limit_bytes=vmem_limit,
        ),
    )(x_folded)

    # Stage 2: single-block micro kernel (whole arrays in VMEM, runs once).
    gate = pl.pallas_call(
        functools.partial(_mlp_kernel, num_folds=k),
        out_shape=jax.ShapeDtypeStruct((B, C), dtype),
    )(partial, w1, b1.reshape(1, hidden), w2, b2.reshape(1, C))

    return gate.reshape(B, 1, 1, C)


def frequency_attention_ref(x_nhwc, w1, b1, w2, b2):
    """Plain-JAX reference mirroring the PyTorch forward."""
    B = x_nhwc.shape[0]
    pooled = jnp.max(x_nhwc, axis=(1, 2))            # global max-pool -> (B, C)
    h = jax.nn.elu(pooled @ w1 + b1)
    y = h @ w2 + b2
    return jax.nn.sigmoid(y).reshape(B, 1, 1, -1)


if __name__ == "__main__":
    # planes=24, r_factor=6 -> hidden=4
    C, r_factor = 24, 6
    hidden = C // r_factor

    key = jax.random.PRNGKey(0)
    k_w1, k_b1, k_w2, k_b2, k_x1, k_x2, k_x3 = jax.random.split(key, 7)

    # fc1: Linear(C, hidden), fc2: Linear(hidden, C); stored (in, out): y = x @ W + b
    w1 = jax.random.normal(k_w1, (C, hidden), dtype=jnp.float32) * 0.1
    b1 = jax.random.normal(k_b1, (hidden,), dtype=jnp.float32) * 0.1
    w2 = jax.random.normal(k_w2, (hidden, C), dtype=jnp.float32) * 0.1
    b2 = jax.random.normal(k_b2, (C,), dtype=jnp.float32) * 0.1

    cases = [
        # (B, H, W, key, per-buffer tile budget) -- small shapes, distinct paths
        (2, 16, 16, k_x1, 8 * 1024 * 1024),  # dense fold (kC=384), single block
        (2, 15, 15, k_x2, 8 * 1024 * 1024),  # no dense fold (kC=120), full-dim block
        (2, 24, 24, k_x3, 8 * 1024),         # tiny budget: multi-block stream, 2
                                             # splits, ragged tail, padded grid pt
    ]
    for B, H, W, kx, budget in cases:
        x = jax.random.normal(kx, (B, H, W, C), dtype=jnp.float32)
        out = jax.block_until_ready(
            frequency_attention(x, w1, b1, w2, b2, tile_budget_bytes=budget))
        ref = frequency_attention_ref(x, w1, b1, w2, b2)
        assert out.shape == (B, 1, 1, C), out.shape
        assert jnp.allclose(out, ref, atol=1e-5, rtol=1e-5), "mismatch vs reference"

    print("KERNEL_OK")
</pallas_src>

<mosaic_0001>
module attributes {stable_mosaic.version = 11 : i64} {
  func.func @kernel(%arg0: i32, %arg1: i32, %arg2: memref<2x16x384xf32, #tpu.memory_space<vmem>>, %arg3: memref<1x2x384xf32, #tpu.memory_space<vmem>>) attributes {dimension_semantics = [#tpu.dimension_semantics<parallel>, #tpu.dimension_semantics<arbitrary>], iteration_bounds = array<i64: 1, 1>, scalar_prefetch = 0 : i64, scratch_operands = 0 : i64, tpu.core_type = #tpu.core_type<tc>, window_params = [{transform_indices = @transform_0, window_bounds = array<i64: 2, 16, 384>}, {transform_indices = @transform_1, window_bounds = array<i64: 1, 2, 384>}]} {
    %c0_i32 = arith.constant 0 : i32
    %0 = arith.cmpi eq, %arg1, %c0_i32 : i32
    %1 = arith.extui %0 : i1 to i32
    %c0_i32_0 = arith.constant 0 : i32
    %2 = arith.cmpi ne, %1, %c0_i32_0 : i32
    scf.if %2 {
      %cst_9 = arith.constant 0xFF800000 : f32
      %9 = vector.broadcast %cst_9 : f32 to vector<1x2x384xf32>
      %c0_10 = arith.constant 0 : index
      %c0_11 = arith.constant 0 : index
      %c0_12 = arith.constant 0 : index
      %10 = vector.load %arg3[%c0_10, %c0_11, %c0_12] : memref<1x2x384xf32, #tpu.memory_space<vmem>>, vector<1x2x384xf32>
      tpu.vector_store %arg3[%c0_10, %c0_11, %c0_12], %9 {strides = array<i32>} : memref<1x2x384xf32, #tpu.memory_space<vmem>>, vector<1x2x384xf32>,
    } else {
    }
    %c0 = arith.constant 0 : index
    %c0_1 = arith.constant 0 : index
    %c0_2 = arith.constant 0 : index
    %3 = vector.load %arg2[%c0, %c0_1, %c0_2] : memref<2x16x384xf32, #tpu.memory_space<vmem>>, vector<2x16x384xf32>
    %c0_3 = arith.constant 0 : index
    %c0_4 = arith.constant 0 : index
    %c0_5 = arith.constant 0 : index
    %4 = vector.load %arg3[%c0_3, %c0_4, %c0_5] : memref<1x2x384xf32, #tpu.memory_space<vmem>>, vector<1x2x384xf32>
    %cst = arith.constant dense<0xFF800000> : vector<2x384xf32>
    %5 = vector.multi_reduction <maximumf>, %3, %cst [1] : vector<2x16x384xf32> to vector<2x384xf32>
    %6 = vector.shape_cast %5 : vector<2x384xf32> to vector<1x2x384xf32>
    %7 = arith.maximumf %4, %6 : vector<1x2x384xf32>
    %c0_6 = arith.constant 0 : index
    %c0_7 = arith.constant 0 : index
    %c0_8 = arith.constant 0 : index
    %8 = vector.load %arg3[%c0_6, %c0_7, %c0_8] : memref<1x2x384xf32, #tpu.memory_space<vmem>>, vector<1x2x384xf32>
    tpu.vector_store %arg3[%c0_6, %c0_7, %c0_8], %7 {strides = array<i32>} : memref<1x2x384xf32, #tpu.memory_space<vmem>>, vector<1x2x384xf32>,
    return
  }
  func.func @transform_0(%arg0: i32, %arg1: i32) -> (i32, i32, i32) {
    %c1_i32 = arith.constant 1 : i32
    %0 = arith.muli %arg0, %c1_i32 : i32
    %1 = arith.addi %0, %arg1 : i32
    %c0_i32 = arith.constant 0 : i32
    %c0_i32_0 = arith.constant 0 : i32
    %c0_i32_1 = arith.constant 0 : i32
    return %c0_i32, %1, %c0_i32_0 : i32, i32, i32
  }
  func.func @transform_1(%arg0: i32, %arg1: i32) -> (i32, i32, i32) {
    %c0_i32 = arith.constant 0 : i32
    %c0_i32_0 = arith.constant 0 : i32
    %c0_i32_1 = arith.constant 0 : i32
    return %arg0, %c0_i32, %c0_i32_0 : i32, i32, i32
  }
}

</mosaic_0001>

<bundles_post_ra>
// kernel: tpu_custom_call.1
= control target key start
LH: loop header
LB: loop body
LE: loop exit
PB: predicated region body
PF: predicated region fallthrough
CT: control target
= control target key end

     0   :  { %6 = vsyncpa [#allocation3], 0  ;;  %s219_s0 = inlined_call_operand.hbm [shape: f32[2,16,384], index: 0, kind: input, shape index: {}]   ;;  %s220_s1 = inlined_call_operand.hbm [shape: f32[1,2,384], index: 1, kind: output, shape index: {}]  }
   0x1   :  { %7 = vsyncpa [#allocation4], 0  ;;  %s17_s8 = sshll.u32 %s219_s0, 4  ;;  %s198_s9 = smov [#allocation2]   ;;  %s18_s8 = int_to_ptr.hbm [resolvable:$true] %s17_s8 }
   0x2   :  { %s19_s10 = sshll.u32 %s198_s9, 4  ;;  %s199_s11 = smov 384   ;;  %s20_s10 = int_to_ptr.vmem [resolvable:$true] %s19_s10 }
   0x3   :  { %s200_s12 = smov 24  }
   0x4   :  { %25 = dma.hbm_to_vmem [thread:$0]  %s18_s8, 1536, %s20_s10, [#allocation3], %s199_s11, %s199_s11, %s200_s12  }
   0x5   :  { %194 = dma.done.wait [#allocation3], 1536  }
   0x6   :  { %195 = vsyncadd [#allocation3], 4294965760  ;;  %v201_v0 = vmov -inf   ;;  %v37_v1 = vld [vmem:[#allocation2] sm:$0xff]  ;;  %v38_v2 = vld [vmem:[#allocation2 + $0x8] sm:$0xff]  ;;  %vm102_vm0 = vcmask 1041408  }
   0x7   :  { %36 = vst [vmem:[#allocation5] sm:$0x3f] %v201_v0  ;;  %v39_v3 = vld [vmem:[#allocation2 + $0x10] sm:$0xff]  ;;  %v40_v4 = vld [vmem:[#allocation2 + $0x18] sm:$0xff]  ;;  %v41_v5 = vld [vmem:[#allocation2 + $0x20] sm:$0xff]  ;;  %vm104_vm1 = vcmask 1043456  }
   0x8   :  { %v42_v6 = vld [vmem:[#allocation2 + $0x28] sm:$0xff]  ;;  %v43_v7 = vld [vmem:[#allocation2 + $0x30] sm:$0xff]  ;;  %v44_v8 = vld [vmem:[#allocation2 + $0x38] sm:$0xff]  ;;  %v50_v10 = vmax.f32 %v37_v1, %v40_v4  ;;  %v57_v11 = vmax.f32 %v38_v2, %v41_v5  ;;  %vm113_vm2 = vcmask 1041409   ;;  %vm115_vm3 = vcmask 1043459   ;;  %s202_s0 = smov [#allocation5]  }
   0x9   :  { %v45_v9 = vld [vmem:[#allocation2 + $0x40] sm:$0xff]  ;;  %v64_v12 = vmax.f32 %v39_v3, %v42_v6  ;;  %v46_v13 = vld [vmem:[#allocation2 + $0x48] sm:$0xff]  ;;  %v47_v14 = vld [vmem:[#allocation2 + $0x50] sm:$0xff]  ;;  %vm117_vm4 = vcmask 1045509   ;;  %vm119_vm5 = vcmask 1047559   ;;  %s129_s13 = sshll.u32 %s202_s0, 4  ;;  %s130_s13 = int_to_ptr.vmem [resolvable:$true] %s129_s13 }
   0xa   :  { %v48_v15 = vld [vmem:[#allocation2 + $0x58] sm:$0xff]  ;;  %v51_v16 = vrot.slane %v50_v10, 4  ;;  %v58_v17 = vrot.slane %v57_v11, 4  ;;  %v71_v19 = vmax.f32 %v43_v7, %v46_v13  ;;  %v78_v20 = vmax.f32 %v44_v8, %v47_v14  ;;  %s131_s16 = sshll.u32 %s220_s1, 4  ;;  %s132_s16 = int_to_ptr.hbm [resolvable:$true] %s131_s16 }
   0xb   :  { %v65_v18 = vrot.slane %v64_v12, 4  ;;  %v85_v21 = vmax.f32 %v45_v9, %v48_v15 }
   0xc   :  { %v52_v22 = vmax.f32 %v50_v10, %v51_v16  ;;  %v59_v23 = vmax.f32 %v57_v11, %v58_v17  ;;  %v72_v25 = vrot.slane %v71_v19, 4  ;;  %v79_v26 = vrot.slane %v78_v20, 4 }
   0xd   :  { %v66_v24 = vmax.f32 %v64_v12, %v65_v18  ;;  %v86_v27 = vrot.slane %v85_v21, 4 }
   0xe   :  { %v53_v28 = vrot.slane %v52_v22, 2  ;;  %v60_v29 = vrot.slane %v59_v23, 2  ;;  %v73_v31 = vmax.f32 %v71_v19, %v72_v25  ;;  %v80_v32 = vmax.f32 %v78_v20, %v79_v26  ;;  %v49_v1 = vld [vmem:[#allocation5] sm:$0x3f] }
   0xf   :  { %v67_v30 = vrot.slane %v66_v24, 2  ;;  %v87_v33 = vmax.f32 %v85_v21, %v86_v27 }
  0x10   :  { %v54_v34 = vmax.f32 %v52_v22, %v53_v28  ;;  %v61_v35 = vmax.f32 %v59_v23, %v60_v29  ;;  %v74_v37 = vrot.slane %v73_v31, 2  ;;  %v81_v38 = vrot.slane %v80_v32, 2 }
  0x11   :  { %v68_v36 = vmax.f32 %v66_v24, %v67_v30  ;;  %v88_v39 = vrot.slane %v87_v33, 2 }
  0x12   :  { %v55_v40 = vrot.slane %v54_v34, 1  ;;  %v62_v41 = vrot.slane %v61_v35, 1  ;;  %v75_v43 = vmax.f32 %v73_v31, %v74_v37  ;;  %v82_v44 = vmax.f32 %v80_v32, %v81_v38 }
  0x13   :  { %v69_v42 = vrot.slane %v68_v36, 1  ;;  %v89_v45 = vmax.f32 %v87_v33, %v88_v39 }
  0x14   :  { %v63_v46 = vmax.f32 %v61_v35, %v62_v41  ;;  %v76_v48 = vrot.slane %v75_v43, 1  ;;  %v56_v49 = vmax.f32 %v54_v34, %v55_v40  ;;  %v83_v50 = vrot.slane %v82_v44, 1 }
  0x15   :  { %v70_v47 = vmax.f32 %v68_v36, %v69_v42  ;;  %v90_v51 = vrot.slane %v89_v45, 1 }
  0x16   :  { %v98_v52 = vrot.slane %v63_v46, 6  ;;  %v77_v53 = vmax.f32 %v75_v43, %v76_v48  ;;  %v84_v54 = vmax.f32 %v82_v44, %v83_v50 }
  0x17   :  { %v91_v55 = vmax.f32 %v89_v45, %v90_v51  ;;  %v99_v56 = vrot.slane %v70_v47, 4 }
  0x18   :  { %v100_v57 = vrot.slane %v84_v54, 6  ;;  %v103_v59 = vsel %vm102_vm0, %v56_v49, %v98_v52 }
  0x19   :  { %v101_v58 = vrot.slane %v91_v55, 4  ;;  %v105_v61 = vsel %vm104_vm1, %v103_v59, %v99_v56 }
  0x1a   :  { %v106_v60 = vsel %vm102_vm0, %v77_v53, %v100_v57 }
  0x1b   :  { %v107_v62 = vsel %vm104_vm1, %v106_v60, %v101_v58 }
  0x1c   :  { %v112_v63 = vrot.slane %v107_v62, 7 }
  0x1e   :  { %v114_v0 = vsel %vm113_vm2, %v112_v63, %v105_v61 }
  0x1f   :  { %v116_v2 = vsel %vm115_vm3, %v112_v63, %v114_v0 }
  0x20   :  { %v118_v3 = vsel %vm117_vm4, %v112_v63, %v116_v2 }
  0x21   :  { %v120_v4 = vsel %vm119_vm5, %v112_v63, %v118_v3 }
  0x22   :  { %v122_v5 = vmax.f32 %v49_v1, %v120_v4 }
  0x24   :  { %123 = vst [vmem:[#allocation5] sm:$0x3f] %v122_v5 }
  0x25   :  { %134 = dma.vmem_to_hbm [thread:$0]  %s130_s13, 96, %s132_s16, [#allocation4]  }
  0x26   :  { %196 = dma.done.wait [#allocation4], 96  }
  0x27   :  { %197 = vsyncadd [#allocation4], 4294967200 }
  0x28   :  { %139 = vsyncpa [#allocation3], 1 }
  0x29   :  { %140 = vsyncpa [#allocation4], 1 }

</bundles_post_ra>
